<compile_context>
chip_gen: v6e
topology: v6e:2x2x1
jax: 0.10.0
libtpu: 0.0.40
codegen_flags: <defaults>
</compile_context>

<pallas_src>
import jax
import jax.numpy as jnp
from jax.experimental import pallas as pl
from jax.experimental.pallas import tpu as pltpu


def dssm_three_kernel(q_ref, d_ref,
                      wq_ref, bq_ref,
                      wd_ref, bd_ref,
                      wgq_ref, wgd_ref, bg_ref,
                      out_ref):
    # Big matmuls: bf16 operands on the MXU, f32 accumulation.
    q_s = jnp.dot(q_ref[...], wq_ref[...],
                  preferred_element_type=jnp.float32) + bq_ref[...]
    q_s = jnp.maximum(q_s, 0.0)                               # (TB, latent) f32
    d_s = jnp.dot(d_ref[...], wd_ref[...],
                  preferred_element_type=jnp.float32) + bd_ref[...]
    d_s = jnp.maximum(d_s, 0.0)                               # (TB, latent) f32

    # Gamma layer, pre-folded: column 0 = z0 - z1, column 1 = z1 - z0 (f32, tiny).
    logit_pm = (jnp.dot(q_s, wgq_ref[...], preferred_element_type=jnp.float32)
                + jnp.dot(d_s, wgd_ref[...], preferred_element_type=jnp.float32)
                + bg_ref[...])                                # (TB, 2) f32

    # softmax over 2 logits == elementwise sigmoid of the +/- logit difference.
    out_ref[...] = pl.reciprocal(1.0 + jnp.exp(-logit_pm),
                                 approx=True).astype(out_ref.dtype)


def _round_up(x, m):
    return ((x + m - 1) // m) * m


def dssm_three_forward(query_ids, doc_ids, kparams, *, tb_target=512):
    """DSSMThree forward.  Embedding gather is XLA glue; the rest is Pallas."""
    emb = kparams["embeddings"]                               # (vocab, hidden) f32
    b = query_ids.shape[0]

    # Gather + flatten; store bf16 so the HBM round trip of the activation
    # stream into the kernel is halved.
    q_flat = jnp.take(emb, query_ids, axis=0).reshape(b, -1).astype(jnp.bfloat16)
    d_flat = jnp.take(emb, doc_ids, axis=0).reshape(b, -1).astype(jnp.bfloat16)
    in_dim = q_flat.shape[1]
    latent = kparams["wq"].shape[1]

    # Batch tile: multiple of 16 (bf16 sublanes); pad batch to a multiple of TB.
    if b <= tb_target:
        tb = _round_up(b, 16)
    else:
        tb = tb_target
    bp = _round_up(b, tb)
    if bp != b:
        pad = bp - b
        q_flat = jnp.pad(q_flat, ((0, pad), (0, 0)))
        d_flat = jnp.pad(d_flat, ((0, pad), (0, 0)))

    grid = (bp // tb,)
    tile_spec = pl.BlockSpec((tb, in_dim), lambda i: (i, 0))
    resident = lambda shape: pl.BlockSpec(shape, lambda i: (0, 0))

    out = pl.pallas_call(
        dssm_three_kernel,
        out_shape=jax.ShapeDtypeStruct((bp, 2), jnp.float32),
        grid=grid,
        in_specs=[
            tile_spec,                                # q tile   (bf16)
            tile_spec,                                # d tile   (bf16)
            resident((in_dim, latent)),               # wq       (bf16)
            resident((1, latent)),                    # bq       (f32)
            resident((in_dim, latent)),               # wd       (bf16)
            resident((1, latent)),                    # bd       (f32)
            resident((latent, 2)),                    # wgq_pm   (f32)
            resident((latent, 2)),                    # wgd_pm   (f32)
            resident((1, 2)),                         # bg_pm    (f32)
        ],
        out_specs=pl.BlockSpec((tb, 2), lambda i: (i, 0)),
        compiler_params=pltpu.CompilerParams(
            dimension_semantics=("parallel",)),       # 2-TC split on v7x
    )(q_flat, d_flat,
      kparams["wq"], kparams["bq"],
      kparams["wd"], kparams["bd"],
      kparams["wgq"], kparams["wgd"], kparams["bg"])
    return out[:b]


def init_params(key, vocab_size, hidden_size, max_len, latent_out):
    """PyTorch-layout parameters (same shapes as the nn.Module state dict)."""
    ks = jax.random.split(key, 7)
    in_dim = max_len * hidden_size
    return {
        "embeddings":    jax.random.normal(ks[0], (vocab_size, hidden_size), jnp.float32),
        "query_sem_w":   jax.random.normal(ks[1], (latent_out, in_dim), jnp.float32) * 0.02,
        "query_sem_b":   jax.random.normal(ks[2], (latent_out,), jnp.float32) * 0.02,
        "doc_sem_w":     jax.random.normal(ks[3], (latent_out, in_dim), jnp.float32) * 0.02,
        "doc_sem_b":     jax.random.normal(ks[4], (latent_out,), jnp.float32) * 0.02,
        "learn_gamma_w": jax.random.normal(ks[5], (2, 2 * latent_out), jnp.float32) * 0.02,
        "learn_gamma_b": jax.random.normal(ks[6], (2,), jnp.float32) * 0.02,
    }


def prepare_params(params):
    """One-time conversion from PyTorch layout to kernel layout.

    - (out, in) Linear weights -> (in, out), bf16 for the MXU.
    - learn_gamma folded into +/- difference columns so the 2-way softmax
      becomes an elementwise sigmoid in the kernel (kept in f32: tiny matmul).
    """
    latent = params["query_sem_w"].shape[0]
    wg = params["learn_gamma_w"].astype(jnp.float32)          # (2, 2*latent)
    g_diff = wg[0] - wg[1]                                    # (2*latent,)
    g_pm = jnp.stack([g_diff, -g_diff], axis=1)               # (2*latent, 2)
    bg = params["learn_gamma_b"].astype(jnp.float32)
    b_diff = bg[0] - bg[1]
    bg_pm = jnp.stack([b_diff, -b_diff]).reshape(1, 2)        # (1, 2)
    return {
        "embeddings": params["embeddings"].astype(jnp.float32),
        "wq": params["query_sem_w"].T.astype(jnp.bfloat16),   # (in_dim, latent)
        "bq": params["query_sem_b"].astype(jnp.float32).reshape(1, -1),
        "wd": params["doc_sem_w"].T.astype(jnp.bfloat16),     # (in_dim, latent)
        "bd": params["doc_sem_b"].astype(jnp.float32).reshape(1, -1),
        "wgq": g_pm[:latent],                                 # (latent, 2) f32
        "wgd": g_pm[latent:],                                 # (latent, 2) f32
        "bg": bg_pm,                                          # (1, 2) f32
    }


if __name__ == "__main__":
    # Small, deterministic config consistent with the module's forward.
    vocab_size = 100
    hidden_size = 32
    max_len = 8
    latent_out = 32
    batch = 2

    key = jax.random.PRNGKey(0)
    k_params, k_q, k_d = jax.random.split(key, 3)
    params = init_params(k_params, vocab_size, hidden_size, max_len, latent_out)
    kparams = prepare_params(params)                          # one-time layout prep

    query_ids = jax.random.randint(k_q, (batch, max_len), 0, vocab_size, dtype=jnp.int32)
    doc_ids = jax.random.randint(k_d, (batch, max_len), 0, vocab_size, dtype=jnp.int32)

    fwd = jax.jit(dssm_three_forward)
    out = fwd(query_ids, doc_ids, kparams)
    jax.block_until_ready(out)

    # Pure-JAX f32 reference of the original PyTorch math.
    emb = params["embeddings"]
    q_flat = jnp.take(emb, query_ids, axis=0).reshape(batch, -1)
    d_flat = jnp.take(emb, doc_ids, axis=0).reshape(batch, -1)
    q_s = jax.nn.relu(q_flat @ params["query_sem_w"].T + params["query_sem_b"])
    d_s = jax.nn.relu(d_flat @ params["doc_sem_w"].T + params["doc_sem_b"])
    cat = jnp.concatenate([q_s, d_s], axis=1)
    ref = jax.nn.softmax(cat @ params["learn_gamma_w"].T + params["learn_gamma_b"], axis=1)

    # bf16 MXU operands + approx reciprocal -> relaxed tolerance vs f32 reference.
    assert out.shape == (batch, 2)
    assert jnp.allclose(out, ref, atol=2e-2, rtol=2e-2), (out, ref)
    assert jnp.allclose(out.sum(axis=1), 1.0, atol=1e-2)

    print("KERNEL_OK")
</pallas_src>

<mosaic_0001>
module attributes {stable_mosaic.version = 11 : i64} {
  func.func @dssm_three_kernel(%arg0: i32, %arg1: memref<16x256xbf16, #tpu.memory_space<vmem>>, %arg2: memref<16x256xbf16, #tpu.memory_space<vmem>>, %arg3: memref<256x32xbf16, #tpu.memory_space<vmem>>, %arg4: memref<1x32xf32, #tpu.memory_space<vmem>>, %arg5: memref<256x32xbf16, #tpu.memory_space<vmem>>, %arg6: memref<1x32xf32, #tpu.memory_space<vmem>>, %arg7: memref<32x2xf32, #tpu.memory_space<vmem>>, %arg8: memref<32x2xf32, #tpu.memory_space<vmem>>, %arg9: memref<1x2xf32, #tpu.memory_space<vmem>>, %arg10: memref<16x2xf32, #tpu.memory_space<vmem>>) attributes {dimension_semantics = [#tpu.dimension_semantics<parallel>], iteration_bounds = array<i64: 1>, scalar_prefetch = 0 : i64, scratch_operands = 0 : i64, tpu.core_type = #tpu.core_type<tc>, window_params = [{transform_indices = @transform_0, window_bounds = array<i64: 16, 256>}, {transform_indices = @transform_1, window_bounds = array<i64: 16, 256>}, {pipeline_mode = #tpu.pipeline_mode<synchronous>, transform_indices = @transform_2, window_bounds = array<i64: 256, 32>}, {pipeline_mode = #tpu.pipeline_mode<synchronous>, transform_indices = @transform_3, window_bounds = array<i64: 1, 32>}, {pipeline_mode = #tpu.pipeline_mode<synchronous>, transform_indices = @transform_4, window_bounds = array<i64: 256, 32>}, {pipeline_mode = #tpu.pipeline_mode<synchronous>, transform_indices = @transform_5, window_bounds = array<i64: 1, 32>}, {pipeline_mode = #tpu.pipeline_mode<synchronous>, transform_indices = @transform_6, window_bounds = array<i64: 32, 2>}, {pipeline_mode = #tpu.pipeline_mode<synchronous>, transform_indices = @transform_7, window_bounds = array<i64: 32, 2>}, {pipeline_mode = #tpu.pipeline_mode<synchronous>, transform_indices = @transform_8, window_bounds = array<i64: 1, 2>}, {transform_indices = @transform_9, window_bounds = array<i64: 16, 2>}]} {
    %c0 = arith.constant 0 : index
    %c0_0 = arith.constant 0 : index
    %0 = vector.load %arg1[%c0, %c0_0] : memref<16x256xbf16, #tpu.memory_space<vmem>>, vector<16x256xbf16>
    %c0_1 = arith.constant 0 : index
    %c0_2 = arith.constant 0 : index
    %1 = vector.load %arg3[%c0_1, %c0_2] : memref<256x32xbf16, #tpu.memory_space<vmem>>, vector<256x32xbf16>
    %cst = arith.constant dense<0.000000e+00> : vector<16x32xf32>
    %2 = tpu.matmul %0, %1, %cst {dimension_numbers = #tpu.dot_dimension_numbers<[1], [0], [0], [1], [0, 0, 1, 1], [], []>} : vector<16x256xbf16>, vector<256x32xbf16>, vector<16x32xf32> -> vector<16x32xf32>
    %c0_3 = arith.constant 0 : index
    %c0_4 = arith.constant 0 : index
    %3 = vector.load %arg4[%c0_3, %c0_4] : memref<1x32xf32, #tpu.memory_space<vmem>>, vector<1x32xf32>
    %4 = vector.broadcast %3 : vector<1x32xf32> to vector<16x32xf32>
    %5 = arith.addf %2, %4 : vector<16x32xf32>
    %cst_5 = arith.constant 0.000000e+00 : f32
    %6 = vector.broadcast %cst_5 : f32 to vector<16x32xf32>
    %7 = arith.maximumf %5, %6 : vector<16x32xf32>
    %c0_6 = arith.constant 0 : index
    %c0_7 = arith.constant 0 : index
    %8 = vector.load %arg2[%c0_6, %c0_7] : memref<16x256xbf16, #tpu.memory_space<vmem>>, vector<16x256xbf16>
    %c0_8 = arith.constant 0 : index
    %c0_9 = arith.constant 0 : index
    %9 = vector.load %arg5[%c0_8, %c0_9] : memref<256x32xbf16, #tpu.memory_space<vmem>>, vector<256x32xbf16>
    %cst_10 = arith.constant dense<0.000000e+00> : vector<16x32xf32>
    %10 = tpu.matmul %8, %9, %cst_10 {dimension_numbers = #tpu.dot_dimension_numbers<[1], [0], [0], [1], [0, 0, 1, 1], [], []>} : vector<16x256xbf16>, vector<256x32xbf16>, vector<16x32xf32> -> vector<16x32xf32>
    %c0_11 = arith.constant 0 : index
    %c0_12 = arith.constant 0 : index
    %11 = vector.load %arg6[%c0_11, %c0_12] : memref<1x32xf32, #tpu.memory_space<vmem>>, vector<1x32xf32>
    %12 = vector.broadcast %11 : vector<1x32xf32> to vector<16x32xf32>
    %13 = arith.addf %10, %12 : vector<16x32xf32>
    %cst_13 = arith.constant 0.000000e+00 : f32
    %14 = vector.broadcast %cst_13 : f32 to vector<16x32xf32>
    %15 = arith.maximumf %13, %14 : vector<16x32xf32>
    %c0_14 = arith.constant 0 : index
    %c0_15 = arith.constant 0 : index
    %16 = vector.load %arg7[%c0_14, %c0_15] : memref<32x2xf32, #tpu.memory_space<vmem>>, vector<32x2xf32>
    %cst_16 = arith.constant dense<0.000000e+00> : vector<16x2xf32>
    %17 = tpu.matmul %7, %16, %cst_16 {dimension_numbers = #tpu.dot_dimension_numbers<[1], [0], [0], [1], [0, 0, 1, 1], [], []>} : vector<16x32xf32>, vector<32x2xf32>, vector<16x2xf32> -> vector<16x2xf32>
    %c0_17 = arith.constant 0 : index
    %c0_18 = arith.constant 0 : index
    %18 = vector.load %arg8[%c0_17, %c0_18] : memref<32x2xf32, #tpu.memory_space<vmem>>, vector<32x2xf32>
    %cst_19 = arith.constant dense<0.000000e+00> : vector<16x2xf32>
    %19 = tpu.matmul %15, %18, %cst_19 {dimension_numbers = #tpu.dot_dimension_numbers<[1], [0], [0], [1], [0, 0, 1, 1], [], []>} : vector<16x32xf32>, vector<32x2xf32>, vector<16x2xf32> -> vector<16x2xf32>
    %20 = arith.addf %17, %19 : vector<16x2xf32>
    %c0_20 = arith.constant 0 : index
    %c0_21 = arith.constant 0 : index
    %21 = vector.load %arg9[%c0_20, %c0_21] : memref<1x2xf32, #tpu.memory_space<vmem>>, vector<1x2xf32>
    %22 = vector.broadcast %21 : vector<1x2xf32> to vector<16x2xf32>
    %23 = arith.addf %20, %22 : vector<16x2xf32>
    %cst_22 = arith.constant 0.000000e+00 : f32
    %24 = vector.broadcast %cst_22 : f32 to vector<16x2xf32>
    %25 = arith.subf %24, %23 : vector<16x2xf32>
    %26 = math.exp %25 : vector<16x2xf32>
    %cst_23 = arith.constant 1.000000e+00 : f32
    %27 = vector.broadcast %cst_23 : f32 to vector<16x2xf32>
    %28 = arith.addf %27, %26 : vector<16x2xf32>
    %29 = tpu.reciprocal %28 {approx = true} : vector<16x2xf32> -> vector<16x2xf32>
    %c0_24 = arith.constant 0 : index
    %c0_25 = arith.constant 0 : index
    %30 = vector.load %arg10[%c0_24, %c0_25] : memref<16x2xf32, #tpu.memory_space<vmem>>, vector<16x2xf32>
    tpu.vector_store %arg10[%c0_24, %c0_25], %29 {strides = array<i32>} : memref<16x2xf32, #tpu.memory_space<vmem>>, vector<16x2xf32>,
    return
  }
  func.func @transform_0(%arg0: i32) -> (i32, i32) {
    %c0_i32 = arith.constant 0 : i32
    %c0_i32_0 = arith.constant 0 : i32
    return %arg0, %c0_i32 : i32, i32
  }
  func.func @transform_1(%arg0: i32) -> (i32, i32) {
    %c0_i32 = arith.constant 0 : i32
    %c0_i32_0 = arith.constant 0 : i32
    return %arg0, %c0_i32 : i32, i32
  }
  func.func @transform_2(%arg0: i32) -> (i32, i32) {
    %c0_i32 = arith.constant 0 : i32
    %c0_i32_0 = arith.constant 0 : i32
    %c0_i32_1 = arith.constant 0 : i32
    return %c0_i32, %c0_i32_0 : i32, i32
  }
  func.func @transform_3(%arg0: i32) -> (i32, i32) {
    %c0_i32 = arith.constant 0 : i32
    %c0_i32_0 = arith.constant 0 : i32
    %c0_i32_1 = arith.constant 0 : i32
    return %c0_i32, %c0_i32_0 : i32, i32
  }
  func.func @transform_4(%arg0: i32) -> (i32, i32) {
    %c0_i32 = arith.constant 0 : i32
    %c0_i32_0 = arith.constant 0 : i32
    %c0_i32_1 = arith.constant 0 : i32
    return %c0_i32, %c0_i32_0 : i32, i32
  }
  func.func @transform_5(%arg0: i32) -> (i32, i32) {
    %c0_i32 = arith.constant 0 : i32
    %c0_i32_0 = arith.constant 0 : i32
    %c0_i32_1 = arith.constant 0 : i32
    return %c0_i32, %c0_i32_0 : i32, i32
  }
  func.func @transform_6(%arg0: i32) -> (i32, i32) {
    %c0_i32 = arith.constant 0 : i32
    %c0_i32_0 = arith.constant 0 : i32
    %c0_i32_1 = arith.constant 0 : i32
    return %c0_i32, %c0_i32_0 : i32, i32
  }
  func.func @transform_7(%arg0: i32) -> (i32, i32) {
    %c0_i32 = arith.constant 0 : i32
    %c0_i32_0 = arith.constant 0 : i32
    %c0_i32_1 = arith.constant 0 : i32
    return %c0_i32, %c0_i32_0 : i32, i32
  }
  func.func @transform_8(%arg0: i32) -> (i32, i32) {
    %c0_i32 = arith.constant 0 : i32
    %c0_i32_0 = arith.constant 0 : i32
    %c0_i32_1 = arith.constant 0 : i32
    return %c0_i32, %c0_i32_0 : i32, i32
  }
  func.func @transform_9(%arg0: i32) -> (i32, i32) {
    %c0_i32 = arith.constant 0 : i32
    %c0_i32_0 = arith.constant 0 : i32
    return %arg0, %c0_i32 : i32, i32
  }
}

</mosaic_0001>

<bundles_post_ra>
// kernel: dssm_three_forward.1
= control target key start
LH: loop header
LB: loop body
LE: loop exit
PB: predicated region body
PF: predicated region fallthrough
CT: control target
= control target key end

     0   :  { %vm421_vm0 = vcmask 261120   ;;  %vm603_vm1 = vcmask 15360   ;;  %s974_s2 = inlined_call_operand.vmem [shape: bf16[256,32], index: 2, kind: input, shape index: {}]   ;;  %s975_s4 = inlined_call_operand.vmem [shape: bf16[256,32], index: 4, kind: input, shape index: {}]   ;;  %s976_s0 = inlined_call_operand.vmem [shape: bf16[16,256], index: 0, kind: input, shape index: {}]   ;;  %s977_s1 = inlined_call_operand.vmem [shape: bf16[16,256], index: 1, kind: input, shape index: {}]   ;;  %s978_s7 = inlined_call_operand.vmem [shape: f32[32,2], index: 7, kind: input, shape index: {}]   ;;  %s979_s6 = inlined_call_operand.vmem [shape: f32[32,2], index: 6, kind: input, shape index: {}]   ;;  %s980_s3 = inlined_call_operand.vmem [shape: f32[1,32], index: 3, kind: input, shape index: {}]   ;;  %s981_s5 = inlined_call_operand.vmem [shape: f32[1,32], index: 5, kind: input, shape index: {}]   ;;  %s982_s8 = inlined_call_operand.vmem [shape: f32[1,2], index: 8, kind: input, shape index: {}]   ;;  %s983_s9 = inlined_call_operand.vmem [shape: f32[16,2], index: 9, kind: output, shape index: {}]  }
   0x1   :  { %v731_v0 = vld [vmem:[%s974_s2 + $0x78] sm:$0xff]   ;;  %v735_v4 = vld [vmem:[%s974_s2 + $0x70] sm:$0xff]   ;;  %v739_v8 = vld [vmem:[%s974_s2 + $0x68] sm:$0xff]  }
   0x2   :  { %v732_v1 = vld [vmem:[%s975_s4 + $0x78] sm:$0xff]   ;;  %653 = vmatprep.subr.bf16.mxu0 %v731_v0  ;;  %v736_v5 = vld [vmem:[%s975_s4 + $0x70] sm:$0xff]   ;;  %v740_v9 = vld [vmem:[%s975_s4 + $0x68] sm:$0xff]  }
   0x3   :  { %v733_v2 = vld [vmem:[%s974_s2 + $0x38] sm:$0xff]   ;;  %675 = vmatprep.subr.bf16.mxu1 %v732_v1  ;;  %v737_v6 = vld [vmem:[%s974_s2 + $0x30] sm:$0xff]   ;;  %v741_v10 = vld [vmem:[%s974_s2 + $0x28] sm:$0xff]  }
   0x4   :  { %v734_v3 = vld [vmem:[%s975_s4 + $0x38] sm:$0xff]   ;;  %654 = vmatpush3.bf16.msra.mxu0 %v733_v2  ;;  %v738_v7 = vld [vmem:[%s975_s4 + $0x30] sm:$0xff]   ;;  %v742_v11 = vld [vmem:[%s975_s4 + $0x28] sm:$0xff]  }
   0x5   :  { %676 = vmatpush3.bf16.msra.mxu1 %v734_v3  ;;  %655 = vmatprep.subr.bf16.mxu0 %v735_v4  ;;  %v743_v12 = vld [vmem:[%s974_s2 + $0x60] sm:$0xff]   ;;  %v747_v16 = vld [vmem:[%s974_s2 + $0x58] sm:$0xff]   ;;  %v751_v20 = vld [vmem:[%s974_s2 + $0x50] sm:$0xff]  }
   0x6   :  { %677 = vmatprep.subr.bf16.mxu1 %v736_v5  ;;  %v744_v13 = vld [vmem:[%s975_s4 + $0x60] sm:$0xff]   ;;  %v748_v17 = vld [vmem:[%s975_s4 + $0x58] sm:$0xff]   ;;  %v752_v21 = vld [vmem:[%s975_s4 + $0x50] sm:$0xff]  }
   0x7   :  { %v745_v14 = vld [vmem:[%s974_s2 + $0x20] sm:$0xff]   ;;  %v749_v18 = vld [vmem:[%s974_s2 + $0x18] sm:$0xff]   ;;  %v753_v22 = vld [vmem:[%s974_s2 + $0x10] sm:$0xff]  }
   0x8   :  { %656 = vmatpush3.bf16.msra.mxu0 %v737_v6  ;;  %v746_v15 = vld [vmem:[%s975_s4 + $0x20] sm:$0xff]   ;;  %v750_v19 = vld [vmem:[%s975_s4 + $0x18] sm:$0xff]   ;;  %v754_v23 = vld [vmem:[%s975_s4 + $0x10] sm:$0xff]  }
   0x9   :  { %678 = vmatpush3.bf16.msra.mxu1 %v738_v7  ;;  %657 = vmatprep.subr.bf16.mxu0 %v739_v8  ;;  %v755_v24 = vld [vmem:[%s974_s2 + $0x48] sm:$0xff]   ;;  %v759_v28 = vld [vmem:[%s974_s2 + $0x40] sm:$0xff]   ;;  %v420_v36 = vld [vmem:[%s978_s7 + $0x18] sm:$0xff] }
   0xa   :  { %679 = vmatprep.subr.bf16.mxu1 %v740_v9  ;;  %v756_v25 = vld [vmem:[%s975_s4 + $0x48] sm:$0xff]   ;;  %v760_v29 = vld [vmem:[%s975_s4 + $0x40] sm:$0xff]   ;;  %v416_v37 = vld [vmem:[%s979_s6 + $0x18] sm:$0xff] }
   0xb   :  { %v757_v26 = vld [vmem:[%s974_s2 + $0x8] sm:$0xff]   ;;  %v761_v30 = vld [vmem:[%s974_s2] sm:$0xff]   ;;  %v419_v38 = vld [vmem:[%s978_s7 + $0x10] sm:$0xff] }
   0xc   :  { %658 = vmatpush3.bf16.msra.mxu0 %v741_v10  ;;  %v758_v27 = vld [vmem:[%s975_s4 + $0x8] sm:$0xff]   ;;  %v762_v31 = vld [vmem:[%s975_s4] sm:$0xff]   ;;  %v415_v39 = vld [vmem:[%s979_s6 + $0x10] sm:$0xff] }
   0xd   :  { %680 = vmatpush3.bf16.msra.mxu1 %v742_v11  ;;  %659 = vmatprep.subr.bf16.mxu0 %v743_v12  ;;  %v763_v32 = vld [vmem:[%s976_s0] ss:$8 sps:$4 sm:$0xff]   ;;  %v765_v33 = vld [vmem:[%s976_s0 + $0x4] ss:$8 sps:$4 sm:$0xff]  }
   0xe   :  { %681 = vmatprep.subr.bf16.mxu1 %v744_v13  ;;  %v766_v34 = vld [vmem:[%s977_s1] ss:$8 sps:$4 sm:$0xff]   ;;  %v768_v35 = vld [vmem:[%s977_s1 + $0x4] ss:$8 sps:$4 sm:$0xff]   ;;  %212 = vmatprep.mubr.bf16.mxu0 %v765_v33 }
   0xf   :  { %402 = vmatprep.mubr.bf16.mxu1 %v768_v35  ;;  %v418_v40 = vld [vmem:[%s978_s7 + $0x8] sm:$0xff]  ;;  %v417_v42 = vld [vmem:[%s978_s7] sm:$0xff] }
  0x10   :  { %660 = vmatpush3.bf16.msra.mxu0 %v745_v14  ;;  %v414_v41 = vld [vmem:[%s979_s6 + $0x8] sm:$0xff]  ;;  %v413_v43 = vld [vmem:[%s979_s6] sm:$0xff] }
  0x11   :  { %682 = vmatpush3.bf16.msra.mxu1 %v746_v15  ;;  %661 = vmatprep.subr.bf16.mxu0 %v747_v16  ;;  %v610_v46 = vld [vmem:[%s980_s3] ss:$0 sm:$0xff] }
  0x12   :  { %683 = vmatprep.subr.bf16.mxu1 %v748_v17  ;;  %v629_v49 = vld [vmem:[%s981_s5] ss:$0 sm:$0xff] }
  0x13   :  { %v652_v4 = vld [vmem:[%s982_s8] ss:$0 sm:$0xff] }
  0x14   :  { %662 = vmatpush3.bf16.msra.mxu0 %v749_v18 }
  0x15   :  { %684 = vmatpush3.bf16.msra.mxu1 %v750_v19  ;;  %663 = vmatprep.subr.bf16.mxu0 %v751_v20 }
  0x16   :  { %685 = vmatprep.subr.bf16.mxu1 %v752_v21 }
  0x18   :  { %664 = vmatpush3.bf16.msra.mxu0 %v753_v22 }
  0x19   :  { %686 = vmatpush3.bf16.msra.mxu1 %v754_v23  ;;  %665 = vmatprep.subr.bf16.mxu0 %v755_v24 }
  0x1a   :  { %687 = vmatprep.subr.bf16.mxu1 %v756_v25 }
  0x1c   :  { %666 = vmatpush3.bf16.msra.mxu0 %v757_v26 }
  0x1d   :  { %688 = vmatpush3.bf16.msra.mxu1 %v758_v27  ;;  %667 = vmatprep.subr.bf16.mxu0 %v759_v28 }
  0x1e   :  { %689 = vmatprep.subr.bf16.mxu1 %v760_v29 }
  0x20   :  { %668 = vmatpush3.bf16.msra.mxu0 %v761_v30 }
  0x21   :  { %690 = vmatpush3.bf16.msra.mxu1 %v762_v31  ;;  %709 = vmatprep.subr.mxu0 %v420_v36 }
  0x22   :  { %720 = vmatprep.subr.mxu1 %v416_v37 }
  0x23   :  { %213 = vmatmul.mubr.bf16.vlgmr.msra.gmra.mxu0 %v763_v32 }
  0x24   :  { %403 = vmatmul.mubr.bf16.vlgmr.msra.gmra.mxu1 %v766_v34  ;;  %710 = vmatpush3.msra.mxu0 %v420_v36 }
  0x25   :  { %721 = vmatpush3.msra.mxu1 %v416_v37  ;;  %711 = vmatprep.subr.mxu0 %v419_v38 }
  0x26   :  { %722 = vmatprep.subr.mxu1 %v415_v39  ;;  %712 = vmatpush3.msra.mxu0 %v419_v38 }
  0x27   :  { %723 = vmatpush3.msra.mxu1 %v415_v39  ;;  %713 = vmatprep.subr.mxu0 %v418_v40 }
  0x28   :  { %724 = vmatprep.subr.mxu1 %v414_v41  ;;  %714 = vmatpush3.msra.mxu0 %v418_v40 }
  0x29   :  { %725 = vmatpush3.msra.mxu1 %v414_v41  ;;  %715 = vmatprep.subr.mxu0 %v417_v42 }
  0x2a   :  { %726 = vmatprep.subr.mxu1 %v413_v43  ;;  %716 = vmatpush3.msra.mxu0 %v417_v42 }
  0x2b   :  { %727 = vmatpush3.msra.mxu1 %v413_v43 }
  0xe3   :  { %v669_v44 = vpop.f32.mrf.mxu0 }
  0xe4   :  { %v691_v45 = vpop.f32.mrf.mxu1 }
  0xe5   :  { %v670_v47 = vpop.f32.mrf.mxu0 }
  0xe6   :  { %v671_v48 = vadd.f32 %v670_v47, %v669_v44  ;;  %v692_v50 = vpop.f32.mrf.mxu1 }
  0xe7   :  { %v693_v51 = vadd.f32 %v692_v50, %v691_v45  ;;  %v672_v52 = vpop.f32.mrf.mxu0 }
  0xe8   :  { %v215_v53 = vadd.f32 %v671_v48, %v610_v46  ;;  %v694_v54 = vpop.f32.mrf.mxu1 }
  0xe9   :  { %v405_v55 = vadd.f32 %v693_v51, %v629_v49  ;;  %v673_v56 = vpop.f32.mrf.mxu0 }
  0xea   :  { %v221_v57 = vmax.f32 %v215_v53, 0.0  ;;  %v674_v58 = vadd.f32 %v673_v56, %v672_v52  ;;  %v695_v59 = vpop.f32.mrf.mxu1 }
  0xeb   :  { %v411_v60 = vmax.f32 %v405_v55, 0.0  ;;  %v696_v61 = vadd.f32 %v695_v59, %v694_v54 }
  0xec   :  { %v218_v62 = vadd.f32 %v674_v58, %v610_v46  ;;  %728 = vmatprep.mubr.msk.f32.mxu1 %vm421_vm0, %v221_v57 }
  0xed   :  { %v408_v63 = vadd.f32 %v696_v61, %v629_v49  ;;  %717 = vmatprep.mubr.msk.f32.mxu0 %vm421_vm0, %v411_v60 }
  0xee   :  { %v222_v0 = vmax.f32 %v218_v62, 0.0 }
  0xef   :  { %v412_v1 = vmax.f32 %v408_v63, 0.0 }
  0xf0   :  { %729 = vmatmul.mubr.msk.f32.vlgmr.msra.gmra.mxu1 %vm421_vm0, %v222_v0 }
  0xf1   :  { %718 = vmatmul.mubr.msk.f32.vlgmr.msra.gmra.mxu0 %vm421_vm0, %v412_v1 }
 0x1b0   :  { %v730_v2 = vpop.f32.mrf.mxu1 }
 0x1b1   :  { %v719_v3 = vpop.f32.mrf.mxu0 }
 0x1b2   :  { %v581_v5 = vadd.f32 %v730_v2, %v719_v3  ;;  %v575_v6 = vpop.f32.mrf.mxu1 }
 0x1b3   :  { %v494_v7 = vpop.f32.mrf.mxu0 }
 0x1b4   :  { %v592_v8 = vadd.f32 %v652_v4, %v581_v5  ;;  %v576_v9 = vadd.f32 %v575_v6, %v494_v7 }
 0x1b6   :  { %v594_v10 = vsub.f32 0.0, %v592_v8  ;;  %v591_v11 = vadd.f32 %v652_v4, %v576_v9 }
 0x1b8   :  { %v597_v12 = vmul.f32 1.442695, %v594_v10  ;;  %v593_v13 = vsub.f32 0.0, %v591_v11 }
 0x1ba   :  { %769 = vpow2.f32 %v597_v12  ;;  %v595_v14 = vmul.f32 1.442695, %v593_v13 }
 0x1bc   :  { %771 = vpow2.f32 %v595_v14 }
 0x1c7   :  { %v770_v15 = vpop.eup %769 }
 0x1c8   :  { %v600_v16 = vadd.f32 1.0, %v770_v15 }
 0x1c9   :  { %v772_v17 = vpop.eup %771 }
 0x1ca   :  { %773 = vrcp.f32 %v600_v16  ;;  %v599_v18 = vadd.f32 1.0, %v772_v17 }
 0x1cc   :  { %775 = vrcp.f32 %v599_v18 }
 0x1d7   :  { %v774_v19 = vpop.eup %773 }
 0x1d8   :  { %605 = vst.msk [vmem:[%s983_s9 + $0x8] sm:$0xff] %vm603_vm1, %v774_v19 }
 0x1d9   :  { %v776_v20 = vpop.eup %775 }
 0x1da   :  { %604 = vst.msk [vmem:[%s983_s9] sm:$0xff] %vm603_vm1, %v776_v20 }

</bundles_post_ra>
